<compile_context>
chip_gen: v7x
topology: tpu7x:2x2x1
jax: 0.10.0
libtpu: 0.0.40
codegen_flags: <defaults>
</compile_context>

<pallas_src>
import jax
import jax.numpy as jnp
from jax.experimental import pallas as pl
from jax.experimental.pallas import tpu as pltpu

IN_F, HID, OUT_F = 2, 5, 1

PAD_N = 8          # batch rows  -> sublane multiple for the MXU tile
PAD_K = 8          # padded contraction dim
LANES = 128        # lane-dense output / weight slab width
BIAS_ROW = PAD_K - 1   # row of the packed slab carrying b_eff (outside rows 0..1
                       # it is multiplied by zero-padded x columns -> dot-safe)


def mlp_kernel(x_ref, p_ref, o_ref, xp_ref):
    # Build the (8,8) MXU tile in VMEM scratch from the natural (N,2) input.
    xp_ref[...] = jnp.zeros_like(xp_ref)
    xp_ref[0:x_ref.shape[0], 0:IN_F] = x_ref[...]

    # Single collapsed affine: (8,8) @ (8,128) on the MXU.
    y = jnp.dot(xp_ref[...], p_ref[...], preferred_element_type=jnp.float32)

    # Bias via VPU broadcast add of the packed bias row; lane-dense full store.
    o_ref[...] = y + p_ref[BIAS_ROW:BIAS_ROW + 1, :]


def pack_params(w1, b1, w2, b2):
    """Collapse both Linear layers (no activation between them) and pack into
    one (8, 128) f32 slab.  Done ONCE at init -- not in the per-call path."""
    w_eff = w1 @ w2            # (2, 1)
    b_eff = b1 @ w2 + b2       # (1,)
    p = jnp.zeros((PAD_K, LANES), jnp.float32)
    p = p.at[0:IN_F, 0:OUT_F].set(w_eff)
    p = p.at[BIAS_ROW, 0:OUT_F].set(b_eff)
    return p


@jax.jit
def mlp_forward(x, packed_params):
    """x: (N, 2) f32 with N <= 8 (retrace per distinct N -- static shape).
    packed_params: (8, 128) from pack_params."""
    n = x.shape[0]
    assert n <= PAD_N and x.shape[1] == IN_F

    full = lambda shape: pl.BlockSpec(shape, lambda: (0,) * len(shape))

    out_padded = pl.pallas_call(
        mlp_kernel,
        out_shape=jax.ShapeDtypeStruct((PAD_N, LANES), jnp.float32),
        in_specs=[
            full(x.shape),           # natural (N,2) x  -> one tiny DMA
            full((PAD_K, LANES)),    # packed params    -> one 4 KiB DMA
        ],
        out_specs=full((PAD_N, LANES)),
        scratch_shapes=[pltpu.VMEM((PAD_N, PAD_K), jnp.float32)],
    )(x, packed_params)

    # Padded rows >= n contain b_eff junk; never consume out_padded directly.
    return out_padded[:n, :OUT_F]


def init_params(key):
    """Deterministic init mimicking nn.Linear default U[-1/sqrt(fan_in), +]."""
    k1, k2, k3, k4 = jax.random.split(key, 4)
    lim1 = 1.0 / jnp.sqrt(IN_F)
    lim2 = 1.0 / jnp.sqrt(HID)
    w1 = jax.random.uniform(k1, (IN_F, HID), jnp.float32, -lim1, lim1)
    b1 = jax.random.uniform(k2, (HID,), jnp.float32, -lim1, lim1)
    w2 = jax.random.uniform(k3, (HID, OUT_F), jnp.float32, -lim2, lim2)
    b2 = jax.random.uniform(k4, (OUT_F,), jnp.float32, -lim2, lim2)
    return w1, b1, w2, b2


if __name__ == "__main__":
    key = jax.random.PRNGKey(0)
    w1, b1, w2, b2 = init_params(key)
    packed = pack_params(w1, b1, w2, b2)   # one-time, hoisted out of call path

    # same input as the PyTorch reference: the 4x2 XOR truth table
    x = jnp.array([[0, 0], [0, 1], [1, 0], [1, 1]], dtype=jnp.float32)

    out = jax.block_until_ready(mlp_forward(x, packed))

    # reference: the original two-stage affine in plain JAX
    ref = (x @ w1 + b1) @ w2 + b2
    assert out.shape == (4, 1), out.shape
    assert jnp.allclose(out, ref, atol=1e-5), (out, ref)

    print("KERNEL_OK")
</pallas_src>

<mosaic_0001>
module attributes {stable_mosaic.version = 11 : i64} {
  func.func @mlp_kernel(%arg0: memref<4x2xf32, #tpu.memory_space<vmem>>, %arg1: memref<8x128xf32, #tpu.memory_space<vmem>>, %arg2: memref<8x128xf32, #tpu.memory_space<vmem>>, %arg3: memref<8x8xf32, #tpu.memory_space<vmem>>) attributes {dimension_semantics = [], scalar_prefetch = 0 : i64, scratch_operands = 1 : i64, tpu.core_type = #tpu.core_type<tc>} {
    %cst = arith.constant 0.000000e+00 : f32
    %0 = vector.broadcast %cst : f32 to vector<8x8xf32>
    %c0 = arith.constant 0 : index
    %c0_0 = arith.constant 0 : index
    %1 = vector.load %arg3[%c0, %c0_0] : memref<8x8xf32, #tpu.memory_space<vmem>>, vector<8x8xf32>
    tpu.vector_store %arg3[%c0, %c0_0], %0 {strides = array<i32>} : memref<8x8xf32, #tpu.memory_space<vmem>>, vector<8x8xf32>,
    %c0_1 = arith.constant 0 : index
    %c0_2 = arith.constant 0 : index
    %2 = vector.load %arg0[%c0_1, %c0_2] : memref<4x2xf32, #tpu.memory_space<vmem>>, vector<4x2xf32>
    %c0_3 = arith.constant 0 : index
    %c0_4 = arith.constant 0 : index
    %3 = vector.load %arg3[%c0_3, %c0_4] : memref<8x8xf32, #tpu.memory_space<vmem>>, vector<4x2xf32>
    tpu.vector_store %arg3[%c0_3, %c0_4], %2 {strides = array<i32>} : memref<8x8xf32, #tpu.memory_space<vmem>>, vector<4x2xf32>,
    %c0_5 = arith.constant 0 : index
    %c0_6 = arith.constant 0 : index
    %4 = vector.load %arg3[%c0_5, %c0_6] : memref<8x8xf32, #tpu.memory_space<vmem>>, vector<8x8xf32>
    %c0_7 = arith.constant 0 : index
    %c0_8 = arith.constant 0 : index
    %5 = vector.load %arg1[%c0_7, %c0_8] : memref<8x128xf32, #tpu.memory_space<vmem>>, vector<8x128xf32>
    %cst_9 = arith.constant dense<0.000000e+00> : vector<8x128xf32>
    %6 = tpu.matmul %4, %5, %cst_9 {dimension_numbers = #tpu.dot_dimension_numbers<[1], [0], [0], [1], [0, 0, 1, 1], [], []>} : vector<8x8xf32>, vector<8x128xf32>, vector<8x128xf32> -> vector<8x128xf32>
    %c7 = arith.constant 7 : index
    %c0_10 = arith.constant 0 : index
    %7 = vector.load %arg1[%c7, %c0_10] : memref<8x128xf32, #tpu.memory_space<vmem>>, vector<1x128xf32>
    %8 = vector.broadcast %7 : vector<1x128xf32> to vector<8x128xf32>
    %9 = arith.addf %6, %8 : vector<8x128xf32>
    %c0_11 = arith.constant 0 : index
    %c0_12 = arith.constant 0 : index
    %10 = vector.load %arg2[%c0_11, %c0_12] : memref<8x128xf32, #tpu.memory_space<vmem>>, vector<8x128xf32>
    tpu.vector_store %arg2[%c0_11, %c0_12], %9 {strides = array<i32>} : memref<8x128xf32, #tpu.memory_space<vmem>>, vector<8x128xf32>,
    return
  }
}

</mosaic_0001>

<bundles_post_ra>
// kernel: mlp_forward.1
= control target key start
LH: loop header
LB: loop body
LE: loop exit
PB: predicated region body
PF: predicated region fallthrough
CT: control target
= control target key end

     0   :  { %vm11_vm0 = vcmask 64512   ;;  %vm14_vm1 = vcmask 11264   ;;  %v112_v0 = vmov 0.0   ;;  %vm113_vm2 = vmmov 0   ;;  %s141_s1 = inlined_call_operand.vmem [shape: f32[8,128], index: 1, kind: input, shape index: {}]   ;;  %s142_s0 = inlined_call_operand.vmem [shape: f32[4,2], index: 0, kind: input, shape index: {}]   ;;  %s143_s2 = inlined_call_operand.vmem [shape: f32[8,128], index: 2, kind: output, shape index: {}]  }
   0x1   :  { %105 = vmatprep.subr.mxu0 %v112_v0  ;;  %v17_v1 = vld [vmem:[%s141_s1] sm:$0xff]  ;;  %107 = vmatprep.mubr.msk.f32.mxu0 %vm113_vm2, %v112_v0  ;;  %12 = vst.msk [vmem:[#allocation2] sm:$0xff] %vm11_vm0, %v112_v0 }
   0x2   :  { %v13_v2 = vld [vmem:[%s142_s0] sm:$0xf]  ;;  %106 = vmatpush3.msra.mxu0 %v17_v1  ;;  %v101_v4 = vld [vmem:[%s141_s1 + $0x7] ss:$0 sm:$0xff] }
   0x3   :  { %15 = vst.msk [vmem:[#allocation2] sm:$0xf] %vm14_vm1, %v13_v2 }
   0xa   :  { %v16_v3 = vld [vmem:[#allocation2] sm:$0xff] }
   0xb   :  { %108 = vmatmul.mubr.msk.f32.vlgmr.msra.gmra.mrb[0].mxu0 %vm11_vm0, %v16_v3 }
  0xde   :  { %v92_v5 = vpop.f32.mrb[0].mxu0 }
  0xdf   :  { %v93_v6 = vadd.f32 %v101_v4, %v92_v5  ;;  %v109_v7 = vpop.f32.mrb[1].mxu0 }
  0xe1   :  { %96 = vst [vmem:[%s143_s2] sm:$0xff] %v93_v6 }

</bundles_post_ra>
